<compile_context>
chip_gen: v7x
topology: tpu7x:2x2x1
jax: 0.10.0
libtpu: 0.0.40
codegen_flags: <defaults>
</compile_context>

<pallas_src>
import functools

import jax
import jax.numpy as jnp
from jax.experimental import pallas as pl
from jax.experimental.pallas import tpu as pltpu


def _classifier_kernel(zie_ref, zre_ref, wmm_ref, b_ref, out_ref, *, img_dim):
    # Two matmuls on the split weight (== one matmul on concat features),
    # bias add, numerically-stable softmax over the class axis.
    w_img = wmm_ref[:img_dim, :]          # static sublane-aligned slice (img_dim % 8 == 0)
    w_rep = wmm_ref[img_dim:, :]

    logits = (
        jnp.dot(zie_ref[...], w_img, preferred_element_type=jnp.float32)
        + jnp.dot(zre_ref[...], w_rep, preferred_element_type=jnp.float32)
        + b_ref[...].astype(jnp.float32)
    )

    m = jnp.max(logits, axis=-1, keepdims=True)
    e = jnp.exp(logits - m)
    denom = jnp.sum(e, axis=-1, keepdims=True)
    # Exact reciprocal to preserve the 1e-5 accuracy bar.
    out_ref[...] = (e * pl.reciprocal(denom, approx=False)).astype(out_ref.dtype)


@functools.partial(jax.jit, static_argnames=("block_b",))
def classifier_forward(zie, zre, w_mm, b_mm, *, block_b=256):
    """Classifier(fc_type='img+rep', concat_type='direct') forward pass.

    zie:  [B, img_dim]
    zre:  [B, rep_dim]
    w_mm: [img_dim + rep_dim, num_class]   (transposed vs. torch's [out, in])
    b_mm: [num_class]
    returns: [B, num_class] softmax probabilities (float32)
    """
    B, img_dim = zie.shape
    _, rep_dim = zre.shape
    D, num_class = w_mm.shape
    assert D == img_dim + rep_dim

    bias = b_mm.reshape(1, num_class)
    kernel = functools.partial(_classifier_kernel, img_dim=img_dim)

    if B > block_b and B % block_b == 0:
        # Batch-tiled path for real batch sizes: weights/bias resident across
        # the grid, batch axis "parallel" (both TCs on v7x take half the batch).
        grid_spec = pltpu.PrefetchScalarGridSpec(
            num_scalar_prefetch=0,
            grid=(B // block_b,),
            in_specs=[
                pl.BlockSpec((block_b, img_dim), lambda i: (i, 0)),
                pl.BlockSpec((block_b, rep_dim), lambda i: (i, 0)),
                pl.BlockSpec((D, num_class), lambda i: (0, 0)),
                pl.BlockSpec((1, num_class), lambda i: (0, 0)),
            ],
            out_specs=pl.BlockSpec((block_b, num_class), lambda i: (i, 0)),
        )
        return pl.pallas_call(
            kernel,
            out_shape=jax.ShapeDtypeStruct((B, num_class), jnp.float32),
            grid_spec=grid_spec,
            compiler_params=pltpu.CompilerParams(
                dimension_semantics=("parallel",)
            ),
        )(zie, zre, w_mm, bias)

    # Small-problem path: no grid, no pipeline — whole arrays live in VMEM.
    vmem = pl.BlockSpec(memory_space=pltpu.MemorySpace.VMEM)
    return pl.pallas_call(
        kernel,
        out_shape=jax.ShapeDtypeStruct((B, num_class), jnp.float32),
        in_specs=[vmem, vmem, vmem, vmem],
        out_specs=vmem,
    )(zie, zre, w_mm, bias)


def init_linear_params(key, in_features, out_features):
    """PyTorch-style Linear init: U(-1/sqrt(fan_in), +1/sqrt(fan_in))."""
    kw, kb = jax.random.split(key)
    bound = 1.0 / (in_features ** 0.5)
    # Stored as [in, out] so the kernel does x @ W directly.
    w = jax.random.uniform(kw, (in_features, out_features), jnp.float32, -bound, bound)
    b = jax.random.uniform(kb, (out_features,), jnp.float32, -bound, bound)
    return w, b


def _reference(zie, zre, w_mm, b_mm):
    return jax.nn.softmax(jnp.concatenate([zie, zre], axis=-1) @ w_mm + b_mm, axis=-1)


if __name__ == "__main__":
    # Module config: img_outputdim=32, rep_output_dim=32, multimodal_dim=16
    # (unused on this branch), bias=True, num_class=16.
    # TODO(synk): fc_type='multimodal' (default) returns None and
    # concat_type='proj' references nonexistent attrs in the PyTorch module;
    # only the 'img+rep'/'direct' branch is implemented.
    img_dim = 32
    rep_dim = 32
    num_class = 16

    key = jax.random.PRNGKey(0)
    k_zie, k_zre, k_fc = jax.random.split(key, 3)

    # Parameters of FC_mm = Linear(img_dim + rep_dim, num_class) (Softmax has none).
    w_mm, b_mm = init_linear_params(k_fc, img_dim + rep_dim, num_class)

    # --- small-batch (no-grid) path ---
    B = 8
    zie = jax.random.normal(k_zie, (B, img_dim), jnp.float32)
    zre = jax.random.normal(k_zre, (B, rep_dim), jnp.float32)

    z = jax.block_until_ready(classifier_forward(zie, zre, w_mm, b_mm))
    z_ref = _reference(zie, zre, w_mm, b_mm)
    assert z.shape == (B, num_class)
    assert jnp.allclose(z, z_ref, atol=1e-5, rtol=1e-5)
    assert jnp.allclose(jnp.sum(z, axis=-1), 1.0, atol=1e-5)

    # --- batch-tiled (parallel grid) path ---
    B2 = 512
    zie2 = jax.random.normal(jax.random.PRNGKey(1), (B2, img_dim), jnp.float32)
    zre2 = jax.random.normal(jax.random.PRNGKey(2), (B2, rep_dim), jnp.float32)

    z2 = jax.block_until_ready(classifier_forward(zie2, zre2, w_mm, b_mm, block_b=128))
    z2_ref = _reference(zie2, zre2, w_mm, b_mm)
    assert z2.shape == (B2, num_class)
    assert jnp.allclose(z2, z2_ref, atol=1e-5, rtol=1e-5)
    assert jnp.allclose(jnp.sum(z2, axis=-1), 1.0, atol=1e-5)

    print("KERNEL_OK")
</pallas_src>

<mosaic_0001>
module attributes {stable_mosaic.version = 11 : i64} {
  func.func @_classifier_kernel(%arg0: memref<8x32xf32, #tpu.memory_space<vmem>>, %arg1: memref<8x32xf32, #tpu.memory_space<vmem>>, %arg2: memref<64x16xf32, #tpu.memory_space<vmem>>, %arg3: memref<1x16xf32, #tpu.memory_space<vmem>>, %arg4: memref<8x16xf32, #tpu.memory_space<vmem>>) attributes {dimension_semantics = [], scalar_prefetch = 0 : i64, scratch_operands = 0 : i64, tpu.core_type = #tpu.core_type<tc>} {
    %c0 = arith.constant 0 : index
    %c0_0 = arith.constant 0 : index
    %0 = vector.load %arg2[%c0, %c0_0] : memref<64x16xf32, #tpu.memory_space<vmem>>, vector<32x16xf32>
    %c32 = arith.constant 32 : index
    %c0_1 = arith.constant 0 : index
    %1 = vector.load %arg2[%c32, %c0_1] : memref<64x16xf32, #tpu.memory_space<vmem>>, vector<32x16xf32>
    %c0_2 = arith.constant 0 : index
    %c0_3 = arith.constant 0 : index
    %2 = vector.load %arg0[%c0_2, %c0_3] : memref<8x32xf32, #tpu.memory_space<vmem>>, vector<8x32xf32>
    %cst = arith.constant dense<0.000000e+00> : vector<8x16xf32>
    %3 = tpu.matmul %2, %0, %cst {dimension_numbers = #tpu.dot_dimension_numbers<[1], [0], [0], [1], [0, 0, 1, 1], [], []>} : vector<8x32xf32>, vector<32x16xf32>, vector<8x16xf32> -> vector<8x16xf32>
    %c0_4 = arith.constant 0 : index
    %c0_5 = arith.constant 0 : index
    %4 = vector.load %arg1[%c0_4, %c0_5] : memref<8x32xf32, #tpu.memory_space<vmem>>, vector<8x32xf32>
    %cst_6 = arith.constant dense<0.000000e+00> : vector<8x16xf32>
    %5 = tpu.matmul %4, %1, %cst_6 {dimension_numbers = #tpu.dot_dimension_numbers<[1], [0], [0], [1], [0, 0, 1, 1], [], []>} : vector<8x32xf32>, vector<32x16xf32>, vector<8x16xf32> -> vector<8x16xf32>
    %6 = arith.addf %3, %5 : vector<8x16xf32>
    %c0_7 = arith.constant 0 : index
    %c0_8 = arith.constant 0 : index
    %7 = vector.load %arg3[%c0_7, %c0_8] : memref<1x16xf32, #tpu.memory_space<vmem>>, vector<1x16xf32>
    %8 = vector.broadcast %7 : vector<1x16xf32> to vector<8x16xf32>
    %9 = arith.addf %6, %8 : vector<8x16xf32>
    %cst_9 = arith.constant dense<0xFF800000> : vector<8xf32>
    %10 = vector.multi_reduction <maximumf>, %9, %cst_9 [1] : vector<8x16xf32> to vector<8xf32>
    %11 = vector.shape_cast %10 : vector<8xf32> to vector<8x1xf32>
    %12 = vector.broadcast %11 : vector<8x1xf32> to vector<8x16xf32>
    %13 = arith.subf %9, %12 : vector<8x16xf32>
    %14 = math.exp %13 : vector<8x16xf32>
    %cst_10 = arith.constant dense<0.000000e+00> : vector<8xf32>
    %15 = vector.multi_reduction <add>, %14, %cst_10 [1] : vector<8x16xf32> to vector<8xf32>
    %16 = vector.shape_cast %15 : vector<8xf32> to vector<8x1xf32>
    %17 = tpu.reciprocal %16 : vector<8x1xf32> -> vector<8x1xf32>
    %18 = vector.broadcast %17 : vector<8x1xf32> to vector<8x16xf32>
    %19 = arith.mulf %14, %18 : vector<8x16xf32>
    %c0_11 = arith.constant 0 : index
    %c0_12 = arith.constant 0 : index
    %20 = vector.load %arg4[%c0_11, %c0_12] : memref<8x16xf32, #tpu.memory_space<vmem>>, vector<8x16xf32>
    tpu.vector_store %arg4[%c0_11, %c0_12], %19 {strides = array<i32>} : memref<8x16xf32, #tpu.memory_space<vmem>>, vector<8x16xf32>,
    return
  }
}

</mosaic_0001>

<bundles_post_ra>
// kernel: classifier_forward.1
= control target key start
LH: loop header
LB: loop body
LE: loop exit
PB: predicated region body
PF: predicated region fallthrough
CT: control target
= control target key end

     0   :  { %v289_v3 = vmov 0.0|0.0   ;;  %vm290_vm0 = vmmov 0   ;;  %v291_v11 = vmov 0.0   ;;  %s366_s0 = inlined_call_operand.vmem [shape: f32[8,32], index: 0, kind: input, shape index: {}]   ;;  %s367_s1 = inlined_call_operand.vmem [shape: f32[8,32], index: 1, kind: input, shape index: {}]   ;;  %s368_s2 = inlined_call_operand.vmem [shape: f32[64,16], index: 2, kind: input, shape index: {}]   ;;  %s369_s3 = inlined_call_operand.vmem [shape: f32[1,16], index: 3, kind: input, shape index: {}]   ;;  %s370_s4 = inlined_call_operand.hbm [shape: f32[8,16], index: 4, kind: output, shape index: {}]  }
   0x1   :  { %v22_v0 = vld [vmem:[%s368_s2 + $0x20] sm:$0xff]  ;;  %v23_v1 = vld [vmem:[%s368_s2 + $0x28] sm:$0xff]  ;;  %245 = vmatprep.subr.bf16.mxu0 %v289_v3  ;;  %251 = vmatprep.subr.bf16.mxu1 %v289_v3  ;;  %v24_v6 = vld [vmem:[%s368_s2 + $0x30] sm:$0xff] }
   0x2   :  { %v18_v2 = vld [vmem:[%s368_s2] sm:$0xff]  ;;  %v246_v4 = vpack.c.bf16 %v23_v1, %v22_v0  ;;  %v19_v5 = vld [vmem:[%s368_s2 + $0x8] sm:$0xff]  ;;  %v25_v7 = vld [vmem:[%s368_s2 + $0x38] sm:$0xff]  ;;  %231 = vmatprep.mubr.msk.f32.mxu0 %vm290_vm0, %v291_v11  ;;  %242 = vmatprep.mubr.msk.f32.mxu1 %vm290_vm0, %v291_v11 }
   0x3   :  { %v252_v8 = vpack.c.bf16 %v19_v5, %v18_v2  ;;  %v20_v9 = vld [vmem:[%s368_s2 + $0x10] sm:$0xff]  ;;  %v21_v10 = vld [vmem:[%s368_s2 + $0x18] sm:$0xff]  ;;  %v249_v12 = vpack.c.bf16 %v25_v7, %v24_v6 }
   0x4   :  { %247 = vmatpush3.bf16.msra.mxu0 %v246_v4 }
   0x5   :  { %9 = vsyncpa [#allocation3], 0  ;;  %253 = vmatpush3.bf16.msra.mxu1 %v252_v8  ;;  %248 = vmatprep.subr.bf16.mxu0 %v289_v3  ;;  %v255_v13 = vpack.c.bf16 %v21_v10, %v20_v9  ;;  %v27_v14 = vld [vmem:[%s367_s1] sm:$0xff]  ;;  %vm28_vm1 = vcmask 261120   ;;  %vm183_vm2 = vcmask 130048  }
   0x6   :  { %254 = vmatprep.subr.bf16.mxu1 %v289_v3  ;;  %v26_v15 = vld [vmem:[%s366_s0] sm:$0xff]  ;;  %s292_s0 = smov [#allocation2]  }
   0x7   :  { %v212_v19 = vld [vmem:[%s369_s3] ss:$0 sm:$0xff]  ;;  %s202_s1 = sshll.u32 %s292_s0, 4  ;;  %s203_s1 = int_to_ptr.vmem [resolvable:$true] %s202_s1 }
   0x8   :  { %250 = vmatpush3.bf16.msra.mxu0 %v249_v12  ;;  %s265_s3 = scalar_lea.vmem %s203_s1, 128  ;;  %p270_p1 = scmp.lt.s32.totalorder %s203_s1, %s203_s1 }
   0x9   :  { %256 = vmatpush3.bf16.msra.mxu1 %v255_v13  ;;  %p266_p0 = scmp.ne.s32.totalorder %s203_s1, %s265_s3  ;;  %p271_p2 = scmp.lt.s32.totalorder %s265_s3, %s265_s3 }
   0xb   :  { %232 = vmatmul.mubr.msk.f32.vlgmr.msra.gmra.mrb[0].mxu0 %vm28_vm1, %v27_v14  ;;  %p272_p3 = por %p271_p2, %p270_p1 }
   0xc   :  { %243 = vmatmul.mubr.msk.f32.vlgmr.msra.gmra.mrb[0].mxu1 %vm28_vm1, %v26_v15 }
   0xd   :  { %p273_p4 = pnand %p272_p3, %p266_p0 }
  0xde   :  { %v98_v16 = vpop.f32.mrb[0].mxu0 }
  0xdf   :  { %v171_v17 = vpop.f32.mrb[0].mxu1  ;;  %v233_v18 = vpop.f32.mrb[1].mxu0 }
  0xe0   :  { %v172_v20 = vadd.f32 %v171_v17, %v98_v16  ;;  %v244_v21 = vpop.f32.mrb[1].mxu1 }
  0xe2   :  { %v182_v22 = vadd.f32 %v212_v19, %v172_v20 }
  0xe4   :  { %v184_v23 = vsel %vm183_vm2, %v182_v22, -inf }
  0xe5   :  { %185 = vmax.xlane.f32.xlu0 %v184_v23 }
 0x172   :  { %v186_v24 = vpop.xlane.xlu0 %185 }
 0x173   :  { %v187_v25 = vsub.f32 %v182_v22, %v186_v24 }
 0x175   :  { %v188_v26 = vmul.f32 1.442695, %v187_v25 }
 0x177   :  { %261 = vpow2.f32 %v188_v26 }
 0x181   :  { %v262_v27 = vpop.eup %261 }
 0x182   :  { %v190_v28 = vsel %vm183_vm2, %v262_v27, 0.0 }
 0x183   :  { %191 = vadd.xlane.f32.xlu0 %v190_v28 }
 0x210   :  { %v192_v29 = vpop.xlane.xlu0 %191 }
 0x211   :  { %263 = vrcp.f32 %v192_v29 }
 0x21b   :  { %v264_v30 = vpop.eup %263 }
 0x21c   :  { %v194_v31 = vmul.f32 %v264_v30, %v262_v27 }
 0x21e   :  { %195 = vst.msk [vmem:[#allocation2] sm:$0xff] %vm183_vm2, %v194_v31 }
 0x21f   :  { %276 = shalt.err (!%p273_p4)
}
 0x220   :  { %s277_s12 = scalar_lea.hbm %s370_s4, 128 }
 0x221   :  { %p278_p5 = scmp.ne.s32.totalorder %s370_s4, %s277_s12  ;;  %p281_p6 = scmp.lt.u32.totalorder %s277_s12, %s370_s4 }
 0x223   :  { %p283_p7 = pnand %p281_p6, %p278_p5 }
 0x225   :  { %286 = shalt.err (!%p283_p7)
}
 0x226   :  { %205 = dma.vmem_to_hbm [thread:$0]  %s203_s1, 128, %s370_s4, [#allocation3]  }
 0x227   :  { %287 = dma.done.wait [#allocation3], 128  }
 0x228   :  { %288 = vsyncadd [#allocation3], 4294967168 }
 0x229   :  { %209 = vsyncpa [#allocation3], 1 }

</bundles_post_ra>
